<compile_context>
chip_gen: v7x
topology: tpu7x:2x2x1
jax: 0.10.0
libtpu: 0.0.40
codegen_flags: <defaults>
</compile_context>

<pallas_src>
import functools

import jax
import jax.numpy as jnp
from jax.experimental import pallas as pl
from jax.experimental.pallas import tpu as pltpu


def _sigmoid(v):
    # exp goes to the EUP; the divide is expressed via pl.reciprocal.
    # approx=True would also push the divide to the EUP, but the (Bn, C)-sized
    # operand makes that a non-factor, so keep the exact reciprocal.
    return pl.reciprocal(1.0 + jnp.exp(-v), approx=False)


def _se_kernel(x_ref, w1t_ref, w2t_ref, o_ref, *, inv_hw):
    # x_ref  : (Bn, C, HWp)  -- Bn batch elements, spatial flattened + padded
    # w1t_ref: (C, S)        -- first 1x1 conv weight, pre-transposed
    # w2t_ref: (S, C)        -- second 1x1 conv weight, pre-transposed
    # o_ref  : (Bn, C, HWp)
    x = x_ref[...]                                           # native dtype

    # Squeeze: global average pool over spatial (accumulate in f32).  Zero
    # padding along HW is neutral because we divide by the true H*W.
    pooled = jnp.sum(x.astype(jnp.float32), axis=-1) * inv_hw   # (Bn, C)

    # Excitation: 1x1 conv (C->S), SiLU, 1x1 conv (S->C).  Weights arrive
    # already transposed, so these are plain row-major matmuls (no .T).
    h = jnp.dot(pooled, w1t_ref[...].astype(jnp.float32),
                preferred_element_type=jnp.float32)          # (Bn, S)
    h = h * _sigmoid(h)                                      # SiLU
    s = jnp.dot(h, w2t_ref[...].astype(jnp.float32),
                preferred_element_type=jnp.float32)          # (Bn, C)

    # Gate: sigmoid(s) broadcast over spatial.  The multiply runs in x's
    # dtype (exact for f32; avoids a full-slab up/down cast for bf16).
    gate = _sigmoid(s).astype(o_ref.dtype)                   # (Bn, C)
    o_ref[...] = (x.astype(o_ref.dtype) * gate[:, :, None])


def se_block_pallas(x, w1, w2, *, block_batch=None):
    """SEBlock forward.

    x  : (N, C, H, W)
    w1 : (squeeze, C)  -- Conv2d(C, squeeze, 1, bias=False).weight (optionally 4D)
    w2 : (C, squeeze)  -- Conv2d(squeeze, C, 1, bias=False).weight (optionally 4D)
    returns (N, C, H, W), same dtype as x.
    """
    w1 = jnp.asarray(w1)
    w2 = jnp.asarray(w2)
    if w1.ndim == 4:   # raw Conv2d weight (S, C, 1, 1)
        w1 = w1[:, :, 0, 0]
    if w2.ndim == 4:   # raw Conv2d weight (C, S, 1, 1)
        w2 = w2[:, :, 0, 0]

    N, C, H, W = x.shape
    S = w1.shape[0]
    HW = H * W
    itemsize = jnp.dtype(x.dtype).itemsize

    # Lane-dense last dim: pad flattened spatial extent to a multiple of 128.
    HWp = ((HW + 127) // 128) * 128
    x_flat = x.reshape(N, C, HW)
    if HWp != HW:
        x_flat = jnp.pad(x_flat, ((0, 0), (0, 0), (0, HWp - HW)))

    # Batch Bn elements per grid step, capped so the double-buffered
    # input + output blocks stay inside a VMEM budget that fits every TPU
    # generation (v7x has only 64 MiB physical VMEM).
    slab_bytes = C * HWp * itemsize                 # one batch element
    per_block_budget = 8 * 1024 * 1024              # ~32 MiB live w/ double-buffer
    if block_batch is None:
        block_batch = max(1, min(N, per_block_budget // max(slab_bytes, 1)))
    Bn = int(block_batch)
    # TODO(synk): if a single (C, HWp) slab exceeds the budget (very large
    # C*H*W), add an HW-tile grid axis with a two-pass pool/gate structure.

    Np = ((N + Bn - 1) // Bn) * Bn
    if Np != N:
        x_flat = jnp.pad(x_flat, ((0, Np - N), (0, 0), (0, 0)))

    # Pre-transpose the 1x1-conv weights once (host side) so the kernel body
    # has no per-step relayouts of the (constant, resident) weight tiles.
    w1t = w1.T                                      # (C, S)
    w2t = w2.T                                      # (S, C)

    grid = (Np // Bn,)
    block_bytes = Bn * slab_bytes
    vmem_limit = int(min(56 * 1024 * 1024,
                         max(32 * 1024 * 1024, 4 * block_bytes + (1 << 20))))

    w_itemsize = jnp.dtype(w1.dtype).itemsize
    cost = pl.CostEstimate(
        flops=2 * Np * C * HWp + 4 * Np * C * S,
        transcendentals=Np * (C + S),
        bytes_accessed=2 * Np * C * HWp * itemsize + 2 * C * S * w_itemsize,
    )

    kernel = functools.partial(_se_kernel, inv_hw=float(1.0 / HW))

    out_flat = pl.pallas_call(
        kernel,
        out_shape=jax.ShapeDtypeStruct((Np, C, HWp), x.dtype),
        grid_spec=pltpu.PrefetchScalarGridSpec(
            num_scalar_prefetch=0,
            grid=grid,
            in_specs=[
                pl.BlockSpec((Bn, C, HWp), lambda n: (n, 0, 0)),
                pl.BlockSpec((C, S), lambda n: (0, 0)),
                pl.BlockSpec((S, C), lambda n: (0, 0)),
            ],
            out_specs=pl.BlockSpec((Bn, C, HWp), lambda n: (n, 0, 0)),
        ),
        compiler_params=pltpu.CompilerParams(
            dimension_semantics=("parallel",),
            vmem_limit_bytes=vmem_limit,
        ),
        cost_estimate=cost,
    )(x_flat, w1t, w2t)

    return out_flat[:N, :, :HW].reshape(N, C, H, W)


def se_block_ref(x, w1, w2):
    """Pure-JAX reference for correctness checking."""
    pooled = jnp.mean(x, axis=(2, 3))                       # (N, C)
    h = pooled @ w1.T                                       # (N, squeeze)
    h = h * jax.nn.sigmoid(h)                               # SiLU
    s = h @ w2.T                                            # (N, C)
    gate = jax.nn.sigmoid(s)[:, :, None, None]              # (N, C, 1, 1)
    return gate * x


if __name__ == "__main__":
    # Module config: block_in_channels=16, out_channels=4, reduction_ratio=0.25
    # -> squeeze = int(16 * 0.25) = 4
    block_in_channels = 16
    out_channels = 4
    reduction_ratio = 0.25
    squeeze = int(block_in_channels * reduction_ratio)

    N, C, H, W = 2, out_channels, 16, 16

    key = jax.random.PRNGKey(0)
    kx, kw1, kw2 = jax.random.split(key, 3)
    x = jax.random.normal(kx, (N, C, H, W), dtype=jnp.float32)
    # Conv2d weights (kernel_size=1, bias=False), flattened to matrices.
    w1 = jax.random.normal(kw1, (squeeze, C), dtype=jnp.float32) * 0.1
    w2 = jax.random.normal(kw2, (C, squeeze), dtype=jnp.float32) * 0.1

    out = se_block_pallas(x, w1, w2)
    out = jax.block_until_ready(out)

    ref = se_block_ref(x, w1, w2)
    assert out.shape == (N, C, H, W)
    assert jnp.allclose(out, ref, atol=1e-5, rtol=1e-5), "mismatch vs reference"

    print("KERNEL_OK")
</pallas_src>

<mosaic_0001>
module attributes {stable_mosaic.version = 11 : i64} {
  func.func @_se_kernel(%arg0: i32, %arg1: memref<2x4x256xf32, #tpu.memory_space<vmem>>, %arg2: memref<4x4xf32, #tpu.memory_space<vmem>>, %arg3: memref<4x4xf32, #tpu.memory_space<vmem>>, %arg4: memref<2x4x256xf32, #tpu.memory_space<vmem>>) attributes {dimension_semantics = [#tpu.dimension_semantics<parallel>], iteration_bounds = array<i64: 1>, scalar_prefetch = 0 : i64, scratch_operands = 0 : i64, tpu.core_type = #tpu.core_type<tc>, window_params = [{transform_indices = @transform_0, window_bounds = array<i64: 2, 4, 256>}, {pipeline_mode = #tpu.pipeline_mode<synchronous>, transform_indices = @transform_1, window_bounds = array<i64: 4, 4>}, {pipeline_mode = #tpu.pipeline_mode<synchronous>, transform_indices = @transform_2, window_bounds = array<i64: 4, 4>}, {transform_indices = @transform_3, window_bounds = array<i64: 2, 4, 256>}]} {
    %c0 = arith.constant 0 : index
    %c0_0 = arith.constant 0 : index
    %c0_1 = arith.constant 0 : index
    %0 = vector.load %arg1[%c0, %c0_0, %c0_1] : memref<2x4x256xf32, #tpu.memory_space<vmem>>, vector<2x4x256xf32>
    %cst = arith.constant dense<0.000000e+00> : vector<2x4xf32>
    %1 = vector.multi_reduction <add>, %0, %cst [2] : vector<2x4x256xf32> to vector<2x4xf32>
    %cst_2 = arith.constant 3.906250e-03 : f32
    %2 = vector.broadcast %cst_2 : f32 to vector<2x4xf32>
    %3 = arith.mulf %1, %2 : vector<2x4xf32>
    %c0_3 = arith.constant 0 : index
    %c0_4 = arith.constant 0 : index
    %4 = vector.load %arg2[%c0_3, %c0_4] : memref<4x4xf32, #tpu.memory_space<vmem>>, vector<4x4xf32>
    %cst_5 = arith.constant dense<0.000000e+00> : vector<2x4xf32>
    %5 = tpu.matmul %3, %4, %cst_5 {dimension_numbers = #tpu.dot_dimension_numbers<[1], [0], [0], [1], [0, 0, 1, 1], [], []>} : vector<2x4xf32>, vector<4x4xf32>, vector<2x4xf32> -> vector<2x4xf32>
    %cst_6 = arith.constant 0.000000e+00 : f32
    %6 = vector.broadcast %cst_6 : f32 to vector<2x4xf32>
    %7 = arith.subf %6, %5 : vector<2x4xf32>
    %8 = math.exp %7 : vector<2x4xf32>
    %cst_7 = arith.constant 1.000000e+00 : f32
    %9 = vector.broadcast %cst_7 : f32 to vector<2x4xf32>
    %10 = arith.addf %9, %8 : vector<2x4xf32>
    %11 = tpu.reciprocal %10 : vector<2x4xf32> -> vector<2x4xf32>
    %12 = arith.mulf %5, %11 : vector<2x4xf32>
    %c0_8 = arith.constant 0 : index
    %c0_9 = arith.constant 0 : index
    %13 = vector.load %arg3[%c0_8, %c0_9] : memref<4x4xf32, #tpu.memory_space<vmem>>, vector<4x4xf32>
    %cst_10 = arith.constant dense<0.000000e+00> : vector<2x4xf32>
    %14 = tpu.matmul %12, %13, %cst_10 {dimension_numbers = #tpu.dot_dimension_numbers<[1], [0], [0], [1], [0, 0, 1, 1], [], []>} : vector<2x4xf32>, vector<4x4xf32>, vector<2x4xf32> -> vector<2x4xf32>
    %cst_11 = arith.constant 0.000000e+00 : f32
    %15 = vector.broadcast %cst_11 : f32 to vector<2x4xf32>
    %16 = arith.subf %15, %14 : vector<2x4xf32>
    %17 = math.exp %16 : vector<2x4xf32>
    %cst_12 = arith.constant 1.000000e+00 : f32
    %18 = vector.broadcast %cst_12 : f32 to vector<2x4xf32>
    %19 = arith.addf %18, %17 : vector<2x4xf32>
    %20 = tpu.reciprocal %19 : vector<2x4xf32> -> vector<2x4xf32>
    %21 = vector.shape_cast %20 : vector<2x4xf32> to vector<2x4x1xf32>
    %22 = vector.broadcast %21 : vector<2x4x1xf32> to vector<2x4x256xf32>
    %23 = arith.mulf %0, %22 : vector<2x4x256xf32>
    %c0_13 = arith.constant 0 : index
    %c0_14 = arith.constant 0 : index
    %c0_15 = arith.constant 0 : index
    %24 = vector.load %arg4[%c0_13, %c0_14, %c0_15] : memref<2x4x256xf32, #tpu.memory_space<vmem>>, vector<2x4x256xf32>
    tpu.vector_store %arg4[%c0_13, %c0_14, %c0_15], %23 {strides = array<i32>} : memref<2x4x256xf32, #tpu.memory_space<vmem>>, vector<2x4x256xf32>,
    return
  }
  func.func @transform_0(%arg0: i32) -> (i32, i32, i32) {
    %c0_i32 = arith.constant 0 : i32
    %c0_i32_0 = arith.constant 0 : i32
    %c0_i32_1 = arith.constant 0 : i32
    return %arg0, %c0_i32, %c0_i32_0 : i32, i32, i32
  }
  func.func @transform_1(%arg0: i32) -> (i32, i32) {
    %c0_i32 = arith.constant 0 : i32
    %c0_i32_0 = arith.constant 0 : i32
    %c0_i32_1 = arith.constant 0 : i32
    return %c0_i32, %c0_i32_0 : i32, i32
  }
  func.func @transform_2(%arg0: i32) -> (i32, i32) {
    %c0_i32 = arith.constant 0 : i32
    %c0_i32_0 = arith.constant 0 : i32
    %c0_i32_1 = arith.constant 0 : i32
    return %c0_i32, %c0_i32_0 : i32, i32
  }
  func.func @transform_3(%arg0: i32) -> (i32, i32, i32) {
    %c0_i32 = arith.constant 0 : i32
    %c0_i32_0 = arith.constant 0 : i32
    %c0_i32_1 = arith.constant 0 : i32
    return %arg0, %c0_i32, %c0_i32_0 : i32, i32, i32
  }
}

</mosaic_0001>

<bundles_post_ra>
// kernel: tpu_custom_call.1
= control target key start
LH: loop header
LB: loop body
LE: loop exit
PB: predicated region body
PF: predicated region fallthrough
CT: control target
= control target key end

     0   :  { %8 = vsyncpa [#allocation3], 0  ;;  %s494_s0 = inlined_call_operand.hbm [shape: f32[2,4,256], index: 0, kind: input, shape index: {}]   ;;  %s495_s1 = inlined_call_operand.hbm [shape: f32[4,4], index: 1, kind: input, shape index: {}]   ;;  %s496_s2 = inlined_call_operand.vmem [shape: f32[4,4], index: 2, kind: input, shape index: {}]   ;;  %s497_s3 = inlined_call_operand.hbm [shape: f32[2,4,256], index: 3, kind: output, shape index: {}]  }
   0x1   :  { %9 = vsyncpa [#allocation6], 0 }
   0x2   :  { %10 = vsyncpa [#allocation4], 0  ;;  %s403_s12 = smov [#allocation2]   ;;  %s331_s16 = scalar_lea.hbm %s494_s0, 256 }
   0x3   :  { %s16_s13 = sshll.u32 %s403_s12, 4  ;;  %p332_p0 = scmp.ne.s32.totalorder %s494_s0, %s331_s16  ;;  %s17_s13 = int_to_ptr.vmem [resolvable:$true] %s16_s13 }
   0x4   :  { %p335_p1 = scmp.lt.u32.totalorder %s331_s16, %s494_s0 }
   0x6   :  { %p337_p2 = pnand %p335_p1, %p332_p0 }
   0x8   :  { %340 = shalt.err (!%p337_p2)
}
   0x9   :  { %s341_s21 = scalar_lea.vmem %s17_s13, 256  ;;  %p346_p4 = scmp.lt.s32.totalorder %s17_s13, %s17_s13 }
   0xa   :  { %p342_p3 = scmp.ne.s32.totalorder %s17_s13, %s341_s21  ;;  %p347_p5 = scmp.lt.s32.totalorder %s341_s21, %s341_s21 }
   0xc   :  { %p348_p6 = por %p347_p5, %p346_p4 }
   0xe   :  { %p349_p7 = pnand %p348_p6, %p342_p3 }
  0x10   :  { %352 = shalt.err (!%p349_p7)
}
  0x11   :  { %s404_s22 = smov 128   ;;  %s405_s23 = smov 8  }
  0x12   :  { %22 = dma.hbm_to_vmem [thread:$0]  %s494_s0, 256, %s17_s13, [#allocation3], %s404_s22, %s404_s22, %s405_s23  }
  0x13   :  { %s406_s26 = smov [#allocation5]   ;;  %s353_s30 = scalar_lea.hbm %s495_s1, 64 }
  0x14   :  { %s29_s27 = sshll.u32 %s406_s26, 4  ;;  %p354_p8 = scmp.ne.s32.totalorder %s495_s1, %s353_s30  ;;  %s30_s27 = int_to_ptr.vmem [resolvable:$true] %s29_s27 }
  0x15   :  { %p357_p9 = scmp.lt.u32.totalorder %s353_s30, %s495_s1 }
  0x17   :  { %p359_p10 = pnand %p357_p9, %p354_p8 }
  0x19   :  { %362 = shalt.err (!%p359_p10)
}
  0x1a   :  { %s363_s8 = scalar_lea.vmem %s30_s27, 64  ;;  %p368_p12 = scmp.lt.s32.totalorder %s30_s27, %s30_s27 }
  0x1b   :  { %p364_p11 = scmp.ne.s32.totalorder %s30_s27, %s363_s8  ;;  %p369_p13 = scmp.lt.s32.totalorder %s363_s8, %s363_s8 }
  0x1d   :  { %p370_p0 = por %p369_p13, %p368_p12 }
  0x1f   :  { %p371_p1 = pnand %p370_p0, %p364_p11 }
  0x21   :  { %374 = shalt.err (!%p371_p1)
}
  0x22   :  { %32 = dma.hbm_to_vmem [thread:$0]  %s495_s1, 64, %s30_s27, [#allocation6]  }
  0x23   :  { %397 = dma.done.wait [#allocation3], 256  }
  0x24   :  { %398 = vsyncadd [#allocation3], 4294967040 }
  0x25   :  { %399 = dma.done.wait [#allocation6], 64  }
  0x26   :  { %400 = vsyncadd [#allocation6], 4294967232  ;;  %vm49_vm0 = vcmask 1043456   ;;  %v458_v0 = vld [vmem:[#allocation2] sm:$0xff]  ;;  %v460_v1 = vld [vmem:[#allocation2 + $0x8] sm:$0xff]  ;;  %v407_v11 = vmov 0.0   ;;  %v65_v12 = vlaneseq }
  0x27   :  { %v45_v2 = vcombine.high %v458_v0, %v458_v0  ;;  %v50_v3 = vsel %vm49_vm0, %v458_v0, 0.0  ;;  %v46_v4 = vcombine.high %v460_v1, %v460_v1  ;;  %v55_v6 = vsel %vm49_vm0, %v460_v1, 0.0  ;;  %v62_v10 = vld [vmem:[#allocation5] sm:$0xf]  ;;  %303 = vmatprep.subr.mxu0 %v407_v11  ;;  %308 = vmatprep.subr.mxu1 %v407_v11  ;;  %v159_v23 = vld [vmem:[%s496_s2] sm:$0xf] }
  0x28   :  { %vm408_vm1 = vmmov 0   ;;  %304 = vmatpush3.msk.msra.mxu0 %vm49_vm0, %v62_v10  ;;  %v66_v13 = vand.u32 127, %v65_v12  ;;  %v68_v14 = vshrl.u32 %v65_v12, 7  ;;  %vm75_vm2 = vcmask 1041409   ;;  %309 = vmatpush3.msk.msra.mxu1 %vm49_vm0, %v159_v23  ;;  %s410_s2 = smov [#allocation7]  }
  0x29   :  { %v51_v5 = vsel %vm49_vm0, %v45_v2, 0.0  ;;  %v56_v7 = vsel %vm49_vm0, %v46_v4, 0.0  ;;  %305 = vmatprep.mubr.msk.f32.mxu0 %vm408_vm1, %v407_v11  ;;  %310 = vmatprep.mubr.msk.f32.mxu1 %vm408_vm1, %v407_v11  ;;  %vm77_vm3 = vcmask 31744   ;;  %v409_v43 = vmov 839922192   ;;  %s282_s11 = sshll.u32 %s410_s2, 4  ;;  %s283_s11 = int_to_ptr.vmem [resolvable:$true] %s282_s11 }
  0x2a   :  { %v52_v8 = vadd.f32 %v51_v5, %v50_v3  ;;  %v57_v9 = vadd.f32 %v56_v7, %v55_v6  ;;  %v69_v16 = vsub.s32 %v66_v13, %v68_v14  ;;  %v243_v38 = vsub.s32 0, %v68_v14  ;;  %s375_s12 = scalar_lea.vmem %s283_s11, 256  ;;  %p380_p3 = scmp.lt.s32.totalorder %s283_s11, %s283_s11 }
  0x2b   :  { %v250_v41 = vsub.s32 1, %v68_v14  ;;  %v258_v44 = vunpack.c.l.s4 %v409_v43  ;;  %p376_p2 = scmp.ne.s32.totalorder %s283_s11, %s375_s12  ;;  %p381_p4 = scmp.lt.s32.totalorder %s375_s12, %s375_s12 }
  0x2c   :  { %53 = vadd.xlane.f32.xlu0 %v52_v8 }
  0x2d   :  { %v259_v45 = vunpack.c.0.s8 %v258_v44  ;;  %p382_p5 = por %p381_p4, %p380_p3 }
  0x2f   :  { %v262_v46 = vsub.s32 %v259_v45, %v68_v14  ;;  %p383_p6 = pnand %p382_p5, %p376_p2 }
  0x30   :  { %58 = vadd.xlane.f32.xlu0 %v57_v9 }
  0xb9   :  { %v54_v15 = vpop.xlane.xlu0 %53 }
  0xba   :  { %v60_v17 = vmul.f32 0.00390625, %v54_v15 }
  0xbc   :  { %v70_v20 = vrot.slane %v60_v17, %v69_v16 }
  0xbd   :  { %v59_v18 = vpop.xlane.xlu0 %58 }
  0xbe   :  { %v61_v19 = vmul.f32 0.00390625, %v59_v18 }
  0xc0   :  { %v74_v21 = vrot.slane %v61_v19, %v69_v16 }
  0xc2   :  { %v76_v22 = vsel %vm75_vm2, %v74_v21, %v70_v20 }
  0xc3   :  { %306 = vmatmul.mubr.msk.f32.vlgmr.msra.gmra.mrb[0].mxu0 %vm77_vm3, %v76_v22 }
 0x196   :  { %v149_v24 = vpop.f32.mrb[0].mxu0 }
 0x197   :  { %v153_v25 = vsub.f32 0.0, %v149_v24  ;;  %v307_v26 = vpop.f32.mrb[1].mxu0 }
 0x199   :  { %v154_v27 = vmul.f32 1.442695, %v153_v25 }
 0x19b   :  { %323 = vpow2.f32 %v154_v27 }
 0x1a5   :  { %v324_v28 = vpop.eup %323 }
 0x1a6   :  { %v156_v29 = vadd.f32 1.0, %v324_v28 }
 0x1a8   :  { %325 = vrcp.f32 %v156_v29 }
 0x1b2   :  { %v326_v30 = vpop.eup %325 }
 0x1b3   :  { %v158_v31 = vmul.f32 %v326_v30, %v149_v24 }
 0x1b5   :  { %311 = vmatmul.mubr.msk.f32.vlgmr.msra.gmra.mrb[0].mxu1 %vm77_vm3, %v158_v31 }
 0x288   :  { %v232_v32 = vpop.f32.mrb[0].mxu1 }
 0x289   :  { %v236_v33 = vsub.f32 0.0, %v232_v32  ;;  %v312_v34 = vpop.f32.mrb[1].mxu1 }
 0x28b   :  { %v237_v35 = vmul.f32 1.442695, %v236_v33 }
 0x28d   :  { %327 = vpow2.f32 %v237_v35 }
 0x297   :  { %v328_v36 = vpop.eup %327 }
 0x298   :  { %v239_v37 = vadd.f32 1.0, %v328_v36 }
 0x29a   :  { %329 = vrcp.f32 %v239_v37 }
 0x2a4   :  { %v330_v39 = vpop.eup %329 }
 0x2a5   :  { %v244_v40 = vrot.slane %v330_v39, %v243_v38  ;;  %v251_v42 = vrot.slane %v330_v39, %v250_v41 }
 0x2a7   :  { %246 = vbcast.lane.b32.xlu1 %v244_v40, 256 }
 0x2ab   :  { %253 = vbcast.lane.b32.xlu1 %v251_v42, 256 }
 0x319   :  { %v247_v47 = vpop.permute.xlu1 %246 }
 0x31a   :  { %v263_v48 = vrot.slane %v247_v47, %v262_v46 }
 0x31c   :  { %v273_v49 = vmul.f32 %v263_v48, %v458_v0 }
 0x31d   :  { %v254_v50 = vpop.permute.xlu1 %253 }
 0x31e   :  { %275 = vst [vmem:[#allocation7] sm:$0xff] %v273_v49  ;;  %v270_v51 = vrot.slane %v254_v50, %v262_v46 }
 0x320   :  { %v274_v52 = vmul.f32 %v270_v51, %v460_v1 }
 0x322   :  { %276 = vst [vmem:[#allocation7 + $0x8] sm:$0xff] %v274_v52 }
 0x323   :  { %386 = shalt.err (!%p383_p6)
}
 0x324   :  { %s387_s15 = scalar_lea.hbm %s497_s3, 256 }
 0x325   :  { %p388_p7 = scmp.ne.s32.totalorder %s497_s3, %s387_s15  ;;  %p391_p8 = scmp.lt.u32.totalorder %s387_s15, %s497_s3 }
 0x327   :  { %p393_p9 = pnand %p391_p8, %p388_p7 }
 0x329   :  { %396 = shalt.err (!%p393_p9)
}
 0x32a   :  { %288 = dma.vmem_to_hbm [thread:$0]  %s283_s11, 256, %s497_s3, [#allocation4], %s404_s22, %s404_s22, %s405_s23  }
 0x32b   :  { %401 = dma.done.wait [#allocation4], 256  }
 0x32c   :  { %402 = vsyncadd [#allocation4], 4294967040 }
 0x32d   :  { %292 = vsyncpa [#allocation3], 1 }
 0x32e   :  { %293 = vsyncpa [#allocation6], 1 }
 0x32f   :  { %294 = vsyncpa [#allocation4], 1 }

</bundles_post_ra>
